<compile_context>
chip_gen: v7x
topology: tpu7x:2x2x1
jax: 0.10.0
libtpu: 0.0.40
codegen_flags: <defaults>
</compile_context>

<pallas_src>
import math

import jax
import jax.numpy as jnp
from jax import lax
from jax.experimental import pallas as pl
from jax.experimental.pallas import tpu as pltpu


# ------------------------------ helpers ------------------------------------ #

def _round_up(x, m):
    return ((x + m - 1) // m) * m


def _time_chunk(T, cap=16):
    """Largest divisor of T that is <= cap (timesteps processed per grid step)."""
    for c in range(min(T, cap), 0, -1):
        if T % c == 0:
            return c
    return 1


# ----------------------------- Pallas kernels ------------------------------ #

def _matmul_bias_kernel(x_ref, w_ref, b_ref, o_ref):
    """out = x @ w + b. bf16 MXU inputs, f32 accumulation, lane-dense stores."""
    acc = jnp.dot(x_ref[...].astype(w_ref.dtype), w_ref[...],
                  preferred_element_type=jnp.float32)
    o_ref[...] = (acc + b_ref[...]).astype(o_ref.dtype)


def _lstm_rec_kernel(g_ref, whh_t_ref, y_ref, hT_ref, cT_ref):
    """Recurrent part of one LSTM layer over one time chunk.

      g_ref     : (Tc, B, 4H)  precomputed x @ W_ih^T + b  (f32)
      whh_t_ref : (H, 4H)      W_hh transposed             (bf16)
      y_ref     : (Tc, B, H)   per-timestep hidden output  (f32)
      hT_ref    : (B, H)       carried hidden state (constant-index output)
      cT_ref    : (B, H)       carried cell state   (constant-index output)

    Gate order along the 4H axis is [i, f, g, o], matching torch.nn.LSTM.
    The h/c carry lives in the resident output blocks; it is written once per
    chunk (not per timestep), and HBM writeback happens once at grid end.
    """
    Hp = hT_ref.shape[-1]
    Tc = g_ref.shape[0]

    @pl.when(pl.program_id(0) == 0)
    def _():
        hT_ref[...] = jnp.zeros_like(hT_ref)
        cT_ref[...] = jnp.zeros_like(cT_ref)

    w = whh_t_ref[...]                                   # (H, 4H) bf16

    def step(t, carry):
        h, c = carry                                     # f32 (B, H)
        gates = g_ref[t] + jnp.dot(h.astype(w.dtype), w,
                                   preferred_element_type=jnp.float32)
        # Hp is a multiple of 128 -> every gate slice is whole-vreg lane-aligned.
        i_g = jax.nn.sigmoid(gates[:, 0 * Hp:1 * Hp])
        f_g = jax.nn.sigmoid(gates[:, 1 * Hp:2 * Hp])
        g_g = jnp.tanh(gates[:, 2 * Hp:3 * Hp])
        o_g = jax.nn.sigmoid(gates[:, 3 * Hp:4 * Hp])
        c_new = f_g * c + i_g * g_g
        h_new = o_g * jnp.tanh(c_new)
        y_ref[t] = h_new.astype(y_ref.dtype)
        return h_new, c_new

    h_f, c_f = lax.fori_loop(0, Tc, step, (hT_ref[...], cT_ref[...]),
                             unroll=True)
    hT_ref[...] = h_f                                    # one store per chunk
    cT_ref[...] = c_f


# ------------------------------ wrappers ------------------------------------ #

def matmul_bias(x2d, w_t, b_row, *, out_dtype=jnp.float32,
                tm_cap=256, tn_cap=512):
    """x2d: (M, K) f32/bf16; w_t: (K, N) pre-transposed bf16; b_row: (1, N) f32."""
    M, K = x2d.shape
    N = w_t.shape[1]
    tm = M if M <= tm_cap else tm_cap
    tn = N if N <= tn_cap else tn_cap
    Mp, Np = _round_up(M, tm), _round_up(N, tn)
    if Mp != M:
        x2d = jnp.pad(x2d, ((0, Mp - M), (0, 0)))
    if Np != N:
        w_t = jnp.pad(w_t, ((0, 0), (0, Np - N)))
        b_row = jnp.pad(b_row, ((0, 0), (0, Np - N)))

    out = pl.pallas_call(
        _matmul_bias_kernel,
        out_shape=jax.ShapeDtypeStruct((Mp, Np), out_dtype),
        grid_spec=pltpu.PrefetchScalarGridSpec(
            num_scalar_prefetch=0,
            grid=(Mp // tm, Np // tn),
            in_specs=[
                pl.BlockSpec((tm, K), lambda i, j: (i, 0)),
                pl.BlockSpec((K, tn), lambda i, j: (0, j)),
                pl.BlockSpec((1, tn), lambda i, j: (0, j)),
            ],
            out_specs=pl.BlockSpec((tm, tn), lambda i, j: (i, j)),
        ),
        compiler_params=pltpu.CompilerParams(
            dimension_semantics=("parallel", "parallel")),
    )(x2d, w_t, b_row)
    return out[:M, :N]


def lstm_recurrence(g_tbg, whh_t, Hp, *, time_chunk_cap=16):
    """g_tbg: (T, B, 4H) gate pre-activations (f32); whh_t: (H, 4H) bf16."""
    T, B, G4 = g_tbg.shape
    Tc = _time_chunk(T, time_chunk_cap)
    return pl.pallas_call(
        _lstm_rec_kernel,
        out_shape=(jax.ShapeDtypeStruct((T, B, Hp), jnp.float32),
                   jax.ShapeDtypeStruct((B, Hp), jnp.float32),
                   jax.ShapeDtypeStruct((B, Hp), jnp.float32)),
        grid_spec=pltpu.PrefetchScalarGridSpec(
            num_scalar_prefetch=0,
            grid=(T // Tc,),
            in_specs=[
                pl.BlockSpec((Tc, B, G4), lambda c: (c, 0, 0)),
                # Constant-index weight block. For large H, single-buffer this
                # (pipeline_mode=pl.Buffered(1)) to halve its VMEM footprint.
                pl.BlockSpec((Hp, G4), lambda c: (0, 0)),
            ],
            out_specs=(
                pl.BlockSpec((Tc, B, Hp), lambda c: (c, 0, 0)),
                pl.BlockSpec((B, Hp), lambda c: (0, 0)),
                pl.BlockSpec((B, Hp), lambda c: (0, 0)),
            ),
        ),
        compiler_params=pltpu.CompilerParams(
            dimension_semantics=("arbitrary",)),   # time chunks are sequential
    )(g_tbg, whh_t)


def prepare_params(params, compute_dtype=jnp.bfloat16):
    """One-time weight prep: pad to TPU-friendly shapes, transpose, cast to bf16."""
    H = params["emb"].shape[1]
    L = params["wih"].shape[0]
    O = params["wout"].shape[0]
    Hp, Op = _round_up(H, 128), _round_up(O, 128)

    emb = jnp.pad(params["emb"].astype(jnp.float32), ((0, 0), (0, Hp - H)))

    def gate_w_t(w):                               # (4H, H) -> (Hp, 4*Hp)
        w4 = jnp.pad(w.reshape(4, H, H).astype(jnp.float32),
                     ((0, 0), (0, Hp - H), (0, Hp - H)))
        return (jnp.transpose(w4, (2, 0, 1))
                .reshape(Hp, 4 * Hp).astype(compute_dtype))

    def gate_b(bih, bhh):                          # (4H,) -> (1, 4*Hp)
        b4 = jnp.pad((bih + bhh).reshape(4, H).astype(jnp.float32),
                     ((0, 0), (0, Hp - H)))
        return b4.reshape(1, 4 * Hp)

    wih_t = jnp.stack([gate_w_t(params["wih"][l]) for l in range(L)])
    whh_t = jnp.stack([gate_w_t(params["whh"][l]) for l in range(L)])
    bias = jnp.stack([gate_b(params["bih"][l], params["bhh"][l])
                      for l in range(L)])

    wout_t = jnp.pad(params["wout"].astype(jnp.float32),
                     ((0, Op - O), (0, Hp - H))).T.astype(compute_dtype)  # (Hp, Op)
    bout = jnp.pad(params["bout"].astype(jnp.float32), (0, Op - O))[None, :]

    return dict(emb=emb, wih_t=wih_t, whh_t=whh_t, bias=bias,
                wout_t=wout_t, bout=bout,
                dims=dict(H=H, O=O, L=L, Hp=Hp, Op=Op))


def base_decoder_forward(prep, inputs):
    """inputs: (B, T) int32 token ids.
    Returns (outputs (B, T, O), (h_n, c_n)) like BaseDecoder.forward in eval mode
    with length=None, hidden=None."""
    d = prep["dims"]
    H, O, L, Hp, Op = d["H"], d["O"], d["L"], d["Hp"], d["Op"]
    B, T = inputs.shape
    Bp = _round_up(B, 8)

    # Embedding row gather: data-dependent -> plain-JAX glue (padding_idx row is 0).
    x = prep["emb"][inputs]                                  # (B, T, Hp)
    x = jnp.pad(x, ((0, Bp - B), (0, 0), (0, 0)))            # pad batch to mult of 8
    x = jnp.transpose(x, (1, 0, 2))                          # time-major (T, Bp, Hp)
    x2d = x.reshape(T * Bp, Hp)

    h_list, c_list = [], []
    for l in range(L):
        # Non-recurrent part hoisted out of the time loop: one big MXU matmul.
        g2d = matmul_bias(x2d, prep["wih_t"][l], prep["bias"][l])  # (T*Bp, 4Hp) f32
        g = g2d.reshape(T, Bp, 4 * Hp)
        y, h_l, c_l = lstm_recurrence(g, prep["whh_t"][l], Hp)
        h_list.append(h_l[:B, :H])
        c_list.append(c_l[:B, :H])
        x2d = y.reshape(T * Bp, Hp)

    # Output projection: tiled, lane-dense (O padded up to a multiple of 128).
    out2d = matmul_bias(x2d, prep["wout_t"], prep["bout"])         # (T*Bp, Op)
    out = jnp.transpose(out2d.reshape(T, Bp, Op), (1, 0, 2))[:B, :, :O]
    return out, (jnp.stack(h_list), jnp.stack(c_list))


# ----------------------------- reference (pure JAX) ------------------------- #

def ref_forward(params, inputs, matmul_dtype=jnp.float32):
    """Pure-JAX reference of BaseDecoder.forward (eval, length=None, hidden=None).
    matmul_dtype=bfloat16 emulates the kernel's bf16-input / f32-accum matmuls."""
    def mm(a, b):
        return jnp.dot(a.astype(matmul_dtype), b.astype(matmul_dtype),
                       preferred_element_type=jnp.float32)

    L = params["wih"].shape[0]
    x = params["emb"][inputs]                        # (B, T, H)
    B, T, H = x.shape
    hs, cs = [], []
    for l in range(L):
        wih_t, whh_t = params["wih"][l].T, params["whh"][l].T
        b = params["bih"][l] + params["bhh"][l]

        def step(carry, x_t):
            h, c = carry
            gates = mm(x_t, wih_t) + mm(h, whh_t) + b
            i, f, g, o = jnp.split(gates, 4, axis=-1)
            c = jax.nn.sigmoid(f) * c + jax.nn.sigmoid(i) * jnp.tanh(g)
            h = jax.nn.sigmoid(o) * jnp.tanh(c)
            return (h, c), h

        zeros = jnp.zeros((B, H), jnp.float32)
        (h, c), ys = jax.lax.scan(step, (zeros, zeros),
                                  jnp.transpose(x, (1, 0, 2)))
        x = jnp.transpose(ys, (1, 0, 2))
        hs.append(h)
        cs.append(c)
    out = mm(x, params["wout"].T) + params["bout"]
    return out, (jnp.stack(hs), jnp.stack(cs))


# ----------------------------- params / main -------------------------------- #

def init_params(key, hidden_size, vocab_size, output_size, n_layers):
    H, V, O, L = hidden_size, vocab_size, output_size, n_layers
    k = 1.0 / math.sqrt(H)
    keys = jax.random.split(key, 7)
    emb = jax.random.normal(keys[0], (V, H), jnp.float32)
    emb = emb.at[0].set(0.0)                          # padding_idx=0
    wih = jax.random.uniform(keys[1], (L, 4 * H, H), jnp.float32, -k, k)
    whh = jax.random.uniform(keys[2], (L, 4 * H, H), jnp.float32, -k, k)
    bih = jax.random.uniform(keys[3], (L, 4 * H), jnp.float32, -k, k)
    bhh = jax.random.uniform(keys[4], (L, 4 * H), jnp.float32, -k, k)
    wout = jax.random.uniform(keys[5], (O, H), jnp.float32, -k, k)
    bout = jax.random.uniform(keys[6], (O,), jnp.float32, -k, k)
    return dict(emb=emb, wih=wih, whh=whh, bih=bih, bhh=bhh,
                wout=wout, bout=bout)


if __name__ == "__main__":
    B, T = 2, 8
    hidden_size, vocab_size, output_size, n_layers = 32, 20, 16, 2

    root = jax.random.PRNGKey(0)
    k_param, k_tok = jax.random.split(root)
    params = init_params(k_param, hidden_size, vocab_size, output_size, n_layers)
    inputs = jax.random.randint(k_tok, (B, T), 0, vocab_size, dtype=jnp.int32)

    prep = prepare_params(params)                     # one-time weight prep
    out, (h_n, c_n) = base_decoder_forward(prep, inputs)
    out = jax.block_until_ready(out)
    h_n = jax.block_until_ready(h_n)
    c_n = jax.block_until_ready(c_n)

    assert out.shape == (B, T, output_size)
    assert h_n.shape == (n_layers, B, hidden_size)
    assert c_n.shape == (n_layers, B, hidden_size)

    # Tight check vs. a reference with the same bf16-matmul / f32-accum numerics.
    ref_out, (ref_h, ref_c) = ref_forward(params, inputs,
                                          matmul_dtype=jnp.bfloat16)
    assert jnp.allclose(out, ref_out, atol=5e-3, rtol=5e-3)
    assert jnp.allclose(h_n, ref_h, atol=5e-3, rtol=5e-3)
    assert jnp.allclose(c_n, ref_c, atol=5e-3, rtol=5e-3)

    # Looser sanity check vs. the full-f32 (PyTorch-semantics) reference.
    f32_out, (f32_h, f32_c) = ref_forward(params, inputs,
                                          matmul_dtype=jnp.float32)
    assert jnp.allclose(out, f32_out, atol=5e-2, rtol=5e-2)
    assert jnp.allclose(h_n, f32_h, atol=5e-2, rtol=5e-2)
    assert jnp.allclose(c_n, f32_c, atol=5e-2, rtol=5e-2)

    print("KERNEL_OK")
</pallas_src>

<mosaic_0001>
module attributes {stable_mosaic.version = 11 : i64} {
  func.func @_matmul_bias_kernel(%arg0: i32, %arg1: i32, %arg2: memref<64x128xf32, #tpu.memory_space<vmem>>, %arg3: memref<128x512xbf16, #tpu.memory_space<vmem>>, %arg4: memref<1x512xf32, #tpu.memory_space<vmem>>, %arg5: memref<64x512xf32, #tpu.memory_space<vmem>>) attributes {dimension_semantics = [#tpu.dimension_semantics<parallel>, #tpu.dimension_semantics<parallel>], iteration_bounds = array<i64: 1, 1>, scalar_prefetch = 0 : i64, scratch_operands = 0 : i64, tpu.core_type = #tpu.core_type<tc>, window_params = [{transform_indices = @transform_0, window_bounds = array<i64: 64, 128>}, {transform_indices = @transform_1, window_bounds = array<i64: 128, 512>}, {transform_indices = @transform_2, window_bounds = array<i64: 1, 512>}, {transform_indices = @transform_3, window_bounds = array<i64: 64, 512>}]} {
    %c0 = arith.constant 0 : index
    %c0_0 = arith.constant 0 : index
    %0 = vector.load %arg2[%c0, %c0_0] : memref<64x128xf32, #tpu.memory_space<vmem>>, vector<64x128xf32>
    %1 = arith.truncf %0 : vector<64x128xf32> to vector<64x128xbf16>
    %c0_1 = arith.constant 0 : index
    %c0_2 = arith.constant 0 : index
    %2 = vector.load %arg3[%c0_1, %c0_2] : memref<128x512xbf16, #tpu.memory_space<vmem>>, vector<128x512xbf16>
    %cst = arith.constant dense<0.000000e+00> : vector<64x512xf32>
    %3 = tpu.matmul %1, %2, %cst {dimension_numbers = #tpu.dot_dimension_numbers<[1], [0], [0], [1], [0, 0, 1, 1], [], []>} : vector<64x128xbf16>, vector<128x512xbf16>, vector<64x512xf32> -> vector<64x512xf32>
    %c0_3 = arith.constant 0 : index
    %c0_4 = arith.constant 0 : index
    %4 = vector.load %arg4[%c0_3, %c0_4] : memref<1x512xf32, #tpu.memory_space<vmem>>, vector<1x512xf32>
    %5 = vector.broadcast %4 : vector<1x512xf32> to vector<64x512xf32>
    %6 = arith.addf %3, %5 : vector<64x512xf32>
    %c0_5 = arith.constant 0 : index
    %c0_6 = arith.constant 0 : index
    %7 = vector.load %arg5[%c0_5, %c0_6] : memref<64x512xf32, #tpu.memory_space<vmem>>, vector<64x512xf32>
    tpu.vector_store %arg5[%c0_5, %c0_6], %6 {strides = array<i32>} : memref<64x512xf32, #tpu.memory_space<vmem>>, vector<64x512xf32>,
    return
  }
  func.func @transform_0(%arg0: i32, %arg1: i32) -> (i32, i32) {
    %c0_i32 = arith.constant 0 : i32
    %c0_i32_0 = arith.constant 0 : i32
    return %arg0, %c0_i32 : i32, i32
  }
  func.func @transform_1(%arg0: i32, %arg1: i32) -> (i32, i32) {
    %c0_i32 = arith.constant 0 : i32
    %c0_i32_0 = arith.constant 0 : i32
    return %c0_i32, %arg1 : i32, i32
  }
  func.func @transform_2(%arg0: i32, %arg1: i32) -> (i32, i32) {
    %c0_i32 = arith.constant 0 : i32
    %c0_i32_0 = arith.constant 0 : i32
    return %c0_i32, %arg1 : i32, i32
  }
  func.func @transform_3(%arg0: i32, %arg1: i32) -> (i32, i32) {
    %c0_i32 = arith.constant 0 : i32
    return %arg0, %arg1 : i32, i32
  }
}

</mosaic_0001>

<bundles_post_ra>
// kernel: tpu_custom_call.1
= control target key start
LH: loop header
LB: loop body
LE: loop exit
PB: predicated region body
PF: predicated region fallthrough
CT: control target
= control target key end

     0   :  { %8 = vsyncpa [#allocation3], 0  ;;  %s745_s0 = inlined_call_operand.hbm [shape: f32[64,128], index: 0, kind: input, shape index: {}]   ;;  %s746_s1 = inlined_call_operand.hbm [shape: bf16[128,512], index: 1, kind: input, shape index: {}]   ;;  %s747_s2 = inlined_call_operand.vmem [shape: f32[1,512], index: 2, kind: input, shape index: {}]   ;;  %s748_s3 = inlined_call_operand.hbm [shape: f32[64,512], index: 3, kind: output, shape index: {}]  }
   0x1   :  { %9 = vsyncpa [#allocation6], 0 }
   0x2   :  { %10 = vsyncpa [#allocation4], 0  ;;  %s628_s12 = smov [#allocation2]   ;;  %s556_s16 = scalar_lea.hbm %s745_s0, 1024 }
   0x3   :  { %s16_s13 = sshll.u32 %s628_s12, 4  ;;  %p557_p0 = scmp.ne.s32.totalorder %s745_s0, %s556_s16  ;;  %s17_s13 = int_to_ptr.vmem [resolvable:$true] %s16_s13 }
   0x4   :  { %p560_p1 = scmp.lt.u32.totalorder %s556_s16, %s745_s0 }
   0x6   :  { %p562_p2 = pnand %p560_p1, %p557_p0 }
   0x8   :  { %565 = shalt.err (!%p562_p2)
}
   0x9   :  { %s566_s21 = scalar_lea.vmem %s17_s13, 1024  ;;  %p571_p4 = scmp.lt.s32.totalorder %s17_s13, %s17_s13 }
   0xa   :  { %p567_p3 = scmp.ne.s32.totalorder %s17_s13, %s566_s21  ;;  %p572_p5 = scmp.lt.s32.totalorder %s566_s21, %s566_s21 }
   0xc   :  { %p573_p6 = por %p572_p5, %p571_p4 }
   0xe   :  { %p574_p7 = pnand %p573_p6, %p567_p3 }
  0x10   :  { %577 = shalt.err (!%p574_p7)
}
  0x11   :  { %s629_s22 = smov 128   ;;  %s630_s23 = smov 8  }
  0x12   :  { %22 = dma.hbm_to_vmem [thread:$0]  %s745_s0, 1024, %s17_s13, [#allocation3], %s629_s22, %s629_s22, %s630_s23  }
  0x13   :  { %s631_s26 = smov [#allocation5]   ;;  %s578_s30 = scalar_lea.hbm %s746_s1, 4096 }
  0x14   :  { %s28_s27 = sshll.u32 %s631_s26, 4  ;;  %p579_p8 = scmp.ne.s32.totalorder %s746_s1, %s578_s30  ;;  %s29_s27 = int_to_ptr.vmem [resolvable:$true] %s28_s27 }
  0x15   :  { %p582_p9 = scmp.lt.u32.totalorder %s578_s30, %s746_s1 }
  0x17   :  { %p584_p10 = pnand %p582_p9, %p579_p8 }
  0x19   :  { %587 = shalt.err (!%p584_p10)
}
  0x1a   :  { %s588_s8 = scalar_lea.vmem %s29_s27, 4096  ;;  %p593_p12 = scmp.lt.s32.totalorder %s29_s27, %s29_s27 }
  0x1b   :  { %p589_p11 = scmp.ne.s32.totalorder %s29_s27, %s588_s8  ;;  %p594_p13 = scmp.lt.s32.totalorder %s588_s8, %s588_s8 }
  0x1d   :  { %p595_p0 = por %p594_p13, %p593_p12 }
  0x1f   :  { %p596_p1 = pnand %p595_p0, %p589_p11 }
  0x21   :  { %599 = shalt.err (!%p596_p1)
}
  0x22   :  { %s632_s0 = smov 256   ;;  %s633_s9 = smov 16  }
  0x23   :  { %34 = dma.hbm_to_vmem [thread:$0]  %s746_s1, 4096, %s29_s27, [#allocation6], %s632_s0, %s632_s0, %s633_s9  }
  0x24   :  { %622 = dma.done.wait [#allocation3], 1024  }
  0x25   :  { %623 = vsyncadd [#allocation3], 4294966272 }
  0x26   :  { %624 = dma.done.wait [#allocation6], 4096  }
  0x27   :  { %625 = vsyncadd [#allocation6], 4294963200  ;;  %v634_v0 = vmov 0   ;;  %v508_v1 = vld [vmem:[#allocation5 + $0x4] ss:$16 sps:$4 sm:$0xff]   ;;  %v45_v34 = vld [vmem:[#allocation2 + $0x8] sm:$0xff]  ;;  %v90_v45 = vlaneseq }
  0x28   :  { %302 = vmatprep.mubr.bf16.mxu0 %v634_v0  ;;  %375 = vmatprep.mubr.bf16.mxu1 %v634_v0  ;;  %v510_v2 = vld [vmem:[#allocation5 + $0xc] ss:$16 sps:$4 sm:$0xff]   ;;  %v512_v3 = vld [vmem:[#allocation5] ss:$16 sps:$4 sm:$0xff]   ;;  %v513_v4 = vld [vmem:[#allocation5 + $0x8] ss:$16 sps:$4 sm:$0xff]  }
  0x29   :  { %270 = vmatprep.subr.bf16.mxu0 %v508_v1  ;;  %343 = vmatprep.subr.bf16.mxu1 %v510_v2  ;;  %v514_v5 = vld [vmem:[#allocation5 + $0x24] ss:$16 sps:$4 sm:$0xff]   ;;  %v516_v6 = vld [vmem:[#allocation5 + $0x2c] ss:$16 sps:$4 sm:$0xff]   ;;  %v518_v7 = vld [vmem:[#allocation5 + $0x20] ss:$16 sps:$4 sm:$0xff]  }
  0x2a   :  { %271 = vmatpush1.bf16.msra.mxu0 %v512_v3  ;;  %344 = vmatpush1.bf16.msra.mxu1 %v513_v4  ;;  %v519_v8 = vld [vmem:[#allocation5 + $0x28] ss:$16 sps:$4 sm:$0xff]   ;;  %v520_v9 = vld [vmem:[#allocation5 + $0x44] ss:$16 sps:$4 sm:$0xff]   ;;  %v522_v10 = vld [vmem:[#allocation5 + $0x4c] ss:$16 sps:$4 sm:$0xff]  }
  0x2b   :  { %272 = vmatprep.subr.bf16.mxu0 %v514_v5  ;;  %345 = vmatprep.subr.bf16.mxu1 %v516_v6  ;;  %v524_v11 = vld [vmem:[#allocation5 + $0x40] ss:$16 sps:$4 sm:$0xff]   ;;  %v525_v12 = vld [vmem:[#allocation5 + $0x48] ss:$16 sps:$4 sm:$0xff]   ;;  %v526_v13 = vld [vmem:[#allocation5 + $0x64] ss:$16 sps:$4 sm:$0xff]  }
  0x2c   :  { %v528_v14 = vld [vmem:[#allocation5 + $0x6c] ss:$16 sps:$4 sm:$0xff]   ;;  %v530_v15 = vld [vmem:[#allocation5 + $0x60] ss:$16 sps:$4 sm:$0xff]   ;;  %v531_v16 = vld [vmem:[#allocation5 + $0x68] ss:$16 sps:$4 sm:$0xff]  }
  0x2d   :  { %v532_v17 = vld [vmem:[#allocation5 + $0x84] ss:$16 sps:$4 sm:$0xff]   ;;  %v534_v18 = vld [vmem:[#allocation5 + $0x8c] ss:$16 sps:$4 sm:$0xff]   ;;  %v536_v19 = vld [vmem:[#allocation5 + $0x80] ss:$16 sps:$4 sm:$0xff]  }
  0x2e   :  { %273 = vmatpush1.bf16.msra.mxu0 %v518_v7  ;;  %346 = vmatpush1.bf16.msra.mxu1 %v519_v8  ;;  %v537_v20 = vld [vmem:[#allocation5 + $0x88] ss:$16 sps:$4 sm:$0xff]   ;;  %v538_v21 = vld [vmem:[#allocation5 + $0xa4] ss:$16 sps:$4 sm:$0xff]   ;;  %v540_v22 = vld [vmem:[#allocation5 + $0xac] ss:$16 sps:$4 sm:$0xff]  }
  0x2f   :  { %274 = vmatprep.subr.bf16.mxu0 %v520_v9  ;;  %347 = vmatprep.subr.bf16.mxu1 %v522_v10  ;;  %v542_v23 = vld [vmem:[#allocation5 + $0xa0] ss:$16 sps:$4 sm:$0xff]   ;;  %v543_v24 = vld [vmem:[#allocation5 + $0xa8] ss:$16 sps:$4 sm:$0xff]   ;;  %v544_v25 = vld [vmem:[#allocation5 + $0xc4] ss:$16 sps:$4 sm:$0xff]  }
  0x30   :  { %v546_v26 = vld [vmem:[#allocation5 + $0xcc] ss:$16 sps:$4 sm:$0xff]   ;;  %v548_v27 = vld [vmem:[#allocation5 + $0xc0] ss:$16 sps:$4 sm:$0xff]   ;;  %v549_v28 = vld [vmem:[#allocation5 + $0xc8] ss:$16 sps:$4 sm:$0xff]  }
  0x31   :  { %v550_v29 = vld [vmem:[#allocation5 + $0xe4] ss:$16 sps:$4 sm:$0xff]   ;;  %v552_v30 = vld [vmem:[#allocation5 + $0xec] ss:$16 sps:$4 sm:$0xff]   ;;  %v554_v31 = vld [vmem:[#allocation5 + $0xe0] ss:$16 sps:$4 sm:$0xff]  }
  0x32   :  { %275 = vmatpush1.bf16.msra.mxu0 %v524_v11  ;;  %348 = vmatpush1.bf16.msra.mxu1 %v525_v12  ;;  %v555_v32 = vld [vmem:[#allocation5 + $0xe8] ss:$16 sps:$4 sm:$0xff]   ;;  %v44_v33 = vld [vmem:[#allocation2] sm:$0xff]  ;;  %v46_v36 = vld [vmem:[#allocation2 + $0x10] sm:$0xff]  ;;  %v91_v46 = vshrl.u32 %v90_v45, 7 }
  0x33   :  { %276 = vmatprep.subr.bf16.mxu0 %v526_v13  ;;  %349 = vmatprep.subr.bf16.mxu1 %v528_v14  ;;  %v52_v35 = vpack.c.bf16 %v45_v34, %v44_v33  ;;  %v47_v37 = vld [vmem:[#allocation2 + $0x18] sm:$0xff]  ;;  %v48_v39 = vld [vmem:[#allocation2 + $0x20] sm:$0xff]  ;;  %v49_v40 = vld [vmem:[#allocation2 + $0x28] sm:$0xff] }
  0x34   :  { %v53_v38 = vpack.c.bf16 %v47_v37, %v46_v36  ;;  %v54_v41 = vpack.c.bf16 %v49_v40, %v48_v39  ;;  %v50_v42 = vld [vmem:[#allocation2 + $0x30] sm:$0xff]  ;;  %v51_v43 = vld [vmem:[#allocation2 + $0x38] sm:$0xff]  ;;  %v92_v47 = vsub.s32 0, %v91_v46  ;;  %v100_v48 = vsub.s32 2, %v91_v46  ;;  %v88_v49 = vld [vmem:[%s747_s2] sm:$0xf] }
  0x35   :  { %v55_v44 = vpack.c.bf16 %v51_v43, %v50_v42  ;;  %v96_v50 = vsub.s32 1, %v91_v46  ;;  %v104_v51 = vsub.s32 3, %v91_v46  ;;  %s635_s2 = smov [#allocation7]  }
  0x36   :  { %277 = vmatpush1.bf16.msra.mxu0 %v530_v15  ;;  %350 = vmatpush1.bf16.msra.mxu1 %v531_v16  ;;  %v693_v52 = vrot.slane %v88_v49, %v92_v47  ;;  %v695_v53 = vrot.slane %v88_v49, %v100_v48  ;;  %s453_s13 = sshll.u32 %s635_s2, 4  ;;  %s454_s13 = int_to_ptr.vmem [resolvable:$true] %s453_s13 }
  0x37   :  { %278 = vmatprep.subr.bf16.mxu0 %v532_v17  ;;  %351 = vmatprep.subr.bf16.mxu1 %v534_v18  ;;  %v697_v54 = vrot.slane %v88_v49, %v96_v50  ;;  %v699_v55 = vrot.slane %v88_v49, %v104_v51  ;;  %s600_s14 = scalar_lea.vmem %s454_s13, 4096  ;;  %p605_p3 = scmp.lt.s32.totalorder %s454_s13, %s454_s13 }
  0x38   :  { %p601_p2 = scmp.ne.s32.totalorder %s454_s13, %s600_s14  ;;  %p606_p4 = scmp.lt.s32.totalorder %s600_s14, %s600_s14 }
  0x3a   :  { %279 = vmatpush1.bf16.msra.mxu0 %v536_v19  ;;  %352 = vmatpush1.bf16.msra.mxu1 %v537_v20  ;;  %p607_p5 = por %p606_p4, %p605_p3 }
  0x3b   :  { %280 = vmatprep.subr.bf16.mxu0 %v538_v21  ;;  %353 = vmatprep.subr.bf16.mxu1 %v540_v22 }
  0x3c   :  { %p608_p6 = pnand %p607_p5, %p601_p2 }
  0x3e   :  { %281 = vmatpush1.bf16.msra.mxu0 %v542_v23  ;;  %354 = vmatpush1.bf16.msra.mxu1 %v543_v24 }
  0x3f   :  { %282 = vmatprep.subr.bf16.mxu0 %v544_v25  ;;  %355 = vmatprep.subr.bf16.mxu1 %v546_v26 }
  0x42   :  { %283 = vmatpush1.bf16.msra.mxu0 %v548_v27  ;;  %356 = vmatpush1.bf16.msra.mxu1 %v549_v28 }
  0x43   :  { %284 = vmatprep.subr.bf16.mxu0 %v550_v29  ;;  %357 = vmatprep.subr.bf16.mxu1 %v552_v30 }
  0x46   :  { %285 = vmatpush1.bf16.msra.mxu0 %v554_v31  ;;  %358 = vmatpush1.bf16.msra.mxu1 %v555_v32 }
  0x49   :  { %303 = vmatmul.mubr.bf16.vlgmr.msra.gmra.mrb[0].mxu0 %v52_v35  ;;  %376 = vmatmul.mubr.bf16.vlgmr.msra.gmra.mrb[0].mxu1 %v52_v35 }
  0x4a   :  { %312 = vmatprep.mubr.bf16.mxu0 %v634_v0  ;;  %385 = vmatprep.mubr.bf16.mxu1 %v634_v0 }
  0x51   :  { %313 = vmatmul.mubr.bf16.gmra.mrb[4].mxu0 %v53_v38  ;;  %386 = vmatmul.mubr.bf16.gmra.mrb[4].mxu1 %v53_v38 }
  0x52   :  { %322 = vmatprep.mubr.bf16.mxu0 %v634_v0  ;;  %395 = vmatprep.mubr.bf16.mxu1 %v634_v0 }
  0x59   :  { %323 = vmatmul.mubr.bf16.gmra.mrb[8].mxu0 %v54_v41  ;;  %396 = vmatmul.mubr.bf16.gmra.mrb[8].mxu1 %v54_v41 }
  0x5a   :  { %332 = vmatprep.mubr.bf16.mxu0 %v634_v0  ;;  %405 = vmatprep.mubr.bf16.mxu1 %v634_v0 }
  0x61   :  { %333 = vmatmul.mubr.bf16.gmra.mrb[12].mxu0 %v55_v44  ;;  %406 = vmatmul.mubr.bf16.gmra.mrb[12].mxu1 %v55_v44 }
 0x11c   :  { %v304_v56 = vpop.f32.mrb[0].mxu0  ;;  %v377_v57 = vpop.f32.mrb[0].mxu1 }
 0x11d   :  { %v305_v58 = vadd.f32 %v304_v56, %v693_v52  ;;  %v378_v59 = vadd.f32 %v377_v57, %v695_v53  ;;  %v306_v60 = vpop.f32.mrb[1].mxu0  ;;  %v379_v61 = vpop.f32.mrb[1].mxu1 }
 0x11e   :  { %v307_v62 = vadd.f32 %v306_v60, %v697_v54  ;;  %v380_v63 = vadd.f32 %v379_v61, %v699_v55  ;;  %v308_v0 = vpop.f32.mrb[2].mxu0  ;;  %v381_v1 = vpop.f32.mrb[2].mxu1 }
 0x11f   :  { %416 = vst [vmem:[#allocation7] sm:$0xff] %v305_v58  ;;  %418 = vst [vmem:[#allocation7 + $0x10] sm:$0xff] %v378_v59  ;;  %v309_v2 = vadd.f32 %v308_v0, %v693_v52  ;;  %v382_v3 = vadd.f32 %v381_v1, %v695_v53  ;;  %v310_v4 = vpop.f32.mrb[3].mxu0  ;;  %v383_v5 = vpop.f32.mrb[3].mxu1 }
 0x120   :  { %417 = vst [vmem:[#allocation7 + $0x8] sm:$0xff] %v307_v62  ;;  %419 = vst [vmem:[#allocation7 + $0x18] sm:$0xff] %v380_v63  ;;  %v311_v6 = vadd.f32 %v310_v4, %v697_v54  ;;  %v384_v7 = vadd.f32 %v383_v5, %v699_v55 }
 0x121   :  { %420 = vst [vmem:[#allocation7 + $0x20] sm:$0xff] %v309_v2  ;;  %422 = vst [vmem:[#allocation7 + $0x30] sm:$0xff] %v382_v3 }
 0x122   :  { %421 = vst [vmem:[#allocation7 + $0x28] sm:$0xff] %v311_v6  ;;  %423 = vst [vmem:[#allocation7 + $0x38] sm:$0xff] %v384_v7 }
 0x124   :  { %v314_v8 = vpop.f32.mrb[4].mxu0  ;;  %v387_v9 = vpop.f32.mrb[4].mxu1 }
 0x125   :  { %v315_v10 = vadd.f32 %v314_v8, %v693_v52  ;;  %v388_v11 = vadd.f32 %v387_v9, %v695_v53  ;;  %v316_v12 = vpop.f32.mrb[5].mxu0  ;;  %v389_v13 = vpop.f32.mrb[5].mxu1 }
 0x126   :  { %v317_v14 = vadd.f32 %v316_v12, %v697_v54  ;;  %v390_v15 = vadd.f32 %v389_v13, %v699_v55  ;;  %v318_v16 = vpop.f32.mrb[6].mxu0  ;;  %v391_v17 = vpop.f32.mrb[6].mxu1 }
 0x127   :  { %424 = vst [vmem:[#allocation7 + $0x40] sm:$0xff] %v315_v10  ;;  %426 = vst [vmem:[#allocation7 + $0x50] sm:$0xff] %v388_v11  ;;  %v319_v18 = vadd.f32 %v318_v16, %v693_v52  ;;  %v392_v19 = vadd.f32 %v391_v17, %v695_v53  ;;  %v320_v20 = vpop.f32.mrb[7].mxu0  ;;  %v393_v21 = vpop.f32.mrb[7].mxu1 }
 0x128   :  { %425 = vst [vmem:[#allocation7 + $0x48] sm:$0xff] %v317_v14  ;;  %427 = vst [vmem:[#allocation7 + $0x58] sm:$0xff] %v390_v15  ;;  %v321_v22 = vadd.f32 %v320_v20, %v697_v54  ;;  %v394_v23 = vadd.f32 %v393_v21, %v699_v55 }
 0x129   :  { %428 = vst [vmem:[#allocation7 + $0x60] sm:$0xff] %v319_v18  ;;  %430 = vst [vmem:[#allocation7 + $0x70] sm:$0xff] %v392_v19 }
 0x12a   :  { %429 = vst [vmem:[#allocation7 + $0x68] sm:$0xff] %v321_v22  ;;  %431 = vst [vmem:[#allocation7 + $0x78] sm:$0xff] %v394_v23 }
 0x12c   :  { %v324_v24 = vpop.f32.mrb[8].mxu0  ;;  %v397_v25 = vpop.f32.mrb[8].mxu1 }
 0x12d   :  { %v325_v26 = vadd.f32 %v324_v24, %v693_v52  ;;  %v398_v27 = vadd.f32 %v397_v25, %v695_v53  ;;  %v326_v28 = vpop.f32.mrb[9].mxu0  ;;  %v399_v29 = vpop.f32.mrb[9].mxu1 }
 0x12e   :  { %v327_v30 = vadd.f32 %v326_v28, %v697_v54  ;;  %v400_v31 = vadd.f32 %v399_v29, %v699_v55  ;;  %v328_v32 = vpop.f32.mrb[10].mxu0  ;;  %v401_v33 = vpop.f32.mrb[10].mxu1 }
 0x12f   :  { %432 = vst [vmem:[#allocation7 + $0x80] sm:$0xff] %v325_v26  ;;  %434 = vst [vmem:[#allocation7 + $0x90] sm:$0xff] %v398_v27  ;;  %v329_v34 = vadd.f32 %v328_v32, %v693_v52  ;;  %v402_v35 = vadd.f32 %v401_v33, %v695_v53  ;;  %v330_v36 = vpop.f32.mrb[11].mxu0  ;;  %v403_v37 = vpop.f32.mrb[11].mxu1 }
 0x130   :  { %433 = vst [vmem:[#allocation7 + $0x88] sm:$0xff] %v327_v30  ;;  %435 = vst [vmem:[#allocation7 + $0x98] sm:$0xff] %v400_v31  ;;  %v331_v38 = vadd.f32 %v330_v36, %v697_v54  ;;  %v404_v39 = vadd.f32 %v403_v37, %v699_v55 }
 0x131   :  { %436 = vst [vmem:[#allocation7 + $0xa0] sm:$0xff] %v329_v34  ;;  %438 = vst [vmem:[#allocation7 + $0xb0] sm:$0xff] %v402_v35 }
 0x132   :  { %437 = vst [vmem:[#allocation7 + $0xa8] sm:$0xff] %v331_v38  ;;  %439 = vst [vmem:[#allocation7 + $0xb8] sm:$0xff] %v404_v39 }
 0x134   :  { %v334_v40 = vpop.f32.mrb[12].mxu0  ;;  %v407_v41 = vpop.f32.mrb[12].mxu1 }
 0x135   :  { %v335_v42 = vadd.f32 %v334_v40, %v693_v52  ;;  %v408_v43 = vadd.f32 %v407_v41, %v695_v53  ;;  %v336_v44 = vpop.f32.mrb[13].mxu0  ;;  %v409_v45 = vpop.f32.mrb[13].mxu1 }
 0x136   :  { %v337_v46 = vadd.f32 %v336_v44, %v697_v54  ;;  %v410_v47 = vadd.f32 %v409_v45, %v699_v55  ;;  %v338_v48 = vpop.f32.mrb[14].mxu0  ;;  %v411_v49 = vpop.f32.mrb[14].mxu1 }
 0x137   :  { %440 = vst [vmem:[#allocation7 + $0xc0] sm:$0xff] %v335_v42  ;;  %442 = vst [vmem:[#allocation7 + $0xd0] sm:$0xff] %v408_v43  ;;  %v339_v50 = vadd.f32 %v338_v48, %v693_v52  ;;  %v412_v51 = vadd.f32 %v411_v49, %v695_v53  ;;  %v340_v56 = vpop.f32.mrb[15].mxu0  ;;  %v413_v57 = vpop.f32.mrb[15].mxu1 }
 0x138   :  { %441 = vst [vmem:[#allocation7 + $0xc8] sm:$0xff] %v337_v46  ;;  %443 = vst [vmem:[#allocation7 + $0xd8] sm:$0xff] %v410_v47  ;;  %v341_v58 = vadd.f32 %v340_v56, %v697_v54  ;;  %v414_v59 = vadd.f32 %v413_v57, %v699_v55 }
 0x139   :  { %444 = vst [vmem:[#allocation7 + $0xe0] sm:$0xff] %v339_v50  ;;  %446 = vst [vmem:[#allocation7 + $0xf0] sm:$0xff] %v412_v51 }
 0x13a   :  { %445 = vst [vmem:[#allocation7 + $0xe8] sm:$0xff] %v341_v58  ;;  %447 = vst [vmem:[#allocation7 + $0xf8] sm:$0xff] %v414_v59 }
 0x13b   :  { %611 = shalt.err (!%p608_p6)
}
 0x13c   :  { %s612_s17 = scalar_lea.hbm %s748_s3, 4096 }
 0x13d   :  { %p613_p7 = scmp.ne.s32.totalorder %s748_s3, %s612_s17  ;;  %p616_p8 = scmp.lt.u32.totalorder %s612_s17, %s748_s3 }
 0x13f   :  { %p618_p9 = pnand %p616_p8, %p613_p7 }
 0x141   :  { %621 = shalt.err (!%p618_p9)
}
 0x142   :  { %s636_s22 = smov 512   ;;  %s637_s23 = smov 32  }
 0x143   :  { %459 = dma.vmem_to_hbm [thread:$0]  %s454_s13, 4096, %s748_s3, [#allocation4], %s636_s22, %s636_s22, %s637_s23  }
 0x144   :  { %626 = dma.done.wait [#allocation4], 4096  }
 0x145   :  { %627 = vsyncadd [#allocation4], 4294963200 }
 0x146   :  { %463 = vsyncpa [#allocation3], 1 }
 0x147   :  { %464 = vsyncpa [#allocation6], 1 }
 0x148   :  { %465 = vsyncpa [#allocation4], 1 }

</bundles_post_ra>
